<compile_context>
chip_gen: v6e
topology: v6e:2x2x1
jax: 0.10.0
libtpu: 0.0.40
codegen_flags: <defaults>
</compile_context>

<pallas_src>
import functools

import jax
import jax.numpy as jnp
from jax.experimental import pallas as pl
from jax.experimental.pallas import tpu as pltpu

_TARGET_BLOCK_BYTES = 4 * 1024 * 1024       # ~4 MiB of input per grid step
_VMEM_LIMIT_BYTES = 32 * 1024 * 1024        # safe on v5e/v6e/v7x
_SMALL_SINGLE_BLOCK_BYTES = 512 * 1024      # ragged sizes handled as one block


def _swish_kernel(x_ref, o_ref, *, compute_dtype):
    x = x_ref[...].astype(compute_dtype)
    half = jnp.asarray(0.5, dtype=compute_dtype)
    # sigmoid(x) = 0.5 * tanh(0.5 * x) + 0.5  -> one EUP transcendental/element.
    sig = half * jnp.tanh(x * half) + half
    o_ref[...] = (x * sig).astype(o_ref.dtype)


def _sublane_multiple(itemsize: int) -> int:
    # 8 for 4-byte, 16 for 2-byte, 32 for 1-byte dtypes (packed-sublane tiles).
    return max(8, 32 // itemsize)


@functools.lru_cache(maxsize=None)
def _has_native_bf16_units() -> bool:
    # v6e / v7x have bf16 VPU + EUP; v5e and earlier do not.
    try:
        kind = jax.devices()[0].device_kind.lower()
    except Exception:
        return False
    return any(tag in kind for tag in ("v6", "v7", "trillium"))


def _compute_dtype_for(dtype) -> jnp.dtype:
    d = jnp.dtype(dtype)
    if d == jnp.dtype(jnp.bfloat16) and _has_native_bf16_units():
        return d                      # no f32 upcast: half the vreg/EUP work
    return jnp.dtype(jnp.float32)


def _pick_lane_width(size: int, sublane_mult: int):
    # Prefer the largest lane width that divides size AND leaves >= sublane_mult
    # rows (fully dense hardware tiles); then any divisor; None -> ragged path.
    for cand in (2048, 1024, 512, 256, 128):
        if size % cand == 0 and size // cand >= sublane_mult:
            return cand
    for cand in (2048, 1024, 512, 256, 128):
        if size % cand == 0:
            return cand
    return None


def _choose_tile_rows(rows: int, lane: int, itemsize: int, sublane_mult: int) -> int:
    # Target ~4 MiB of input per step; in + out, double-buffered ~= 16 MiB VMEM.
    target = _TARGET_BLOCK_BYTES // (lane * itemsize)
    target = max(sublane_mult, (target // sublane_mult) * sublane_mult)
    if rows <= target:
        if rows >= 2 * sublane_mult:
            # At least 2 steps so pipelining + v7x megacore have work to split.
            half = -(-rows // 2)
            return ((half + sublane_mult - 1) // sublane_mult) * sublane_mult
        return rows  # tiny input: single full-extent block
    # Multiple steps: prefer an even step count (balanced across v7x's 2 TCs).
    t = target
    while t >= sublane_mult:
        if (-(-rows // t)) % 2 == 0:
            return t
        t -= sublane_mult
    return target


def swish(x: jax.Array, *, donate_input: bool = False) -> jax.Array:
    """Elementwise Swish: x * sigmoid(x); same shape/dtype as the input."""
    orig_shape = x.shape
    size = int(x.size)
    if size == 0:
        return x

    itemsize = jnp.dtype(x.dtype).itemsize
    sublane_mult = _sublane_multiple(itemsize)
    compute_dtype = _compute_dtype_for(x.dtype)
    kernel = functools.partial(_swish_kernel, compute_dtype=compute_dtype)

    flat = x.reshape(-1)
    lane = _pick_lane_width(size, sublane_mult)

    if lane is None:
        # Element count is not a multiple of 128.
        if size * itemsize <= _SMALL_SINGLE_BLOCK_BYTES:
            # Single full-extent block: no pad/slice HBM round trip; Mosaic
            # masks the ragged lane edge internally.
            out = pl.pallas_call(
                kernel,
                out_shape=jax.ShapeDtypeStruct((1, size), x.dtype),
            )(flat.reshape(1, size))
            return out.reshape(orig_shape)
        # Large + misaligned is a rare corner: a padded round trip would cost
        # ~2x extra HBM traffic, so use XLA's fused elementwise (at roofline).
        # TODO(synk): masked-store Pallas path for large non-128-multiple sizes.
        return x * jax.nn.sigmoid(x)

    rows = size // lane
    x2d = flat.reshape(rows, lane)
    tile_rows = _choose_tile_rows(rows, lane, itemsize, sublane_mult)
    grid = (pl.cdiv(rows, tile_rows),)

    out = pl.pallas_call(
        kernel,
        out_shape=jax.ShapeDtypeStruct((rows, lane), x.dtype),
        grid_spec=pltpu.PrefetchScalarGridSpec(
            num_scalar_prefetch=0,
            grid=grid,
            in_specs=[pl.BlockSpec((tile_rows, lane), lambda i: (i, 0))],
            out_specs=pl.BlockSpec((tile_rows, lane), lambda i: (i, 0)),
        ),
        compiler_params=pltpu.CompilerParams(
            dimension_semantics=("parallel",),
            vmem_limit_bytes=_VMEM_LIMIT_BYTES,
        ),
        # No bandwidth win, but halves HBM footprint when the caller donates x.
        input_output_aliases=({0: 0} if donate_input else {}),
    )(x2d)
    return out.reshape(orig_shape)


if __name__ == "__main__":
    key = jax.random.PRNGKey(0)
    k1, k2, k3, k4 = jax.random.split(key, 4)

    # 1) Shape consistent with a ContextNet activation input (single block).
    x1 = jax.random.normal(k1, (2, 4, 16, 16), dtype=jnp.float32)
    y1 = jax.block_until_ready(swish(x1))
    assert y1.shape == x1.shape and y1.dtype == x1.dtype
    assert jnp.allclose(y1, x1 * jax.nn.sigmoid(x1), atol=1e-5, rtol=1e-5)

    # 2) Non-128-divisible element count (ragged single-block path).
    x2 = jax.random.normal(k2, (3, 5, 7), dtype=jnp.float32)
    y2 = jax.block_until_ready(swish(x2))
    assert jnp.allclose(y2, x2 * jax.nn.sigmoid(x2), atol=1e-5, rtol=1e-5)

    # 3) Multi-step grid path (rows split into an even number of blocks).
    x3 = jax.random.normal(k3, (4, 64, 128), dtype=jnp.float32)
    y3 = jax.block_until_ready(swish(x3))
    assert jnp.allclose(y3, x3 * jax.nn.sigmoid(x3), atol=1e-5, rtol=1e-5)

    # 4) bf16 path (native bf16 compute on v6e/v7x, f32 upcast on v5e).
    x4 = jax.random.normal(k4, (4, 64, 128), dtype=jnp.bfloat16)
    y4 = jax.block_until_ready(swish(x4))
    x4f = x4.astype(jnp.float32)
    assert y4.dtype == x4.dtype
    assert jnp.allclose(y4.astype(jnp.float32), x4f * jax.nn.sigmoid(x4f),
                        atol=5e-2, rtol=5e-2)

    print("KERNEL_OK")
</pallas_src>

<mosaic_0001>
module attributes {stable_mosaic.version = 11 : i64} {
  func.func @_swish_kernel(%arg0: i32, %arg1: memref<8x256xf32, #tpu.memory_space<vmem>>, %arg2: memref<8x256xf32, #tpu.memory_space<vmem>>) attributes {dimension_semantics = [#tpu.dimension_semantics<parallel>], iteration_bounds = array<i64: 1>, scalar_prefetch = 0 : i64, scratch_operands = 0 : i64, tpu.core_type = #tpu.core_type<tc>, window_params = [{transform_indices = @transform_0, window_bounds = array<i64: 8, 256>}, {transform_indices = @transform_1, window_bounds = array<i64: 8, 256>}]} {
    %c0 = arith.constant 0 : index
    %c0_0 = arith.constant 0 : index
    %0 = vector.load %arg1[%c0, %c0_0] : memref<8x256xf32, #tpu.memory_space<vmem>>, vector<8x256xf32>
    %cst = arith.constant 5.000000e-01 : f32
    %1 = vector.broadcast %cst : f32 to vector<8x256xf32>
    %2 = arith.mulf %0, %1 : vector<8x256xf32>
    %3 = math.tanh %2 : vector<8x256xf32>
    %cst_1 = arith.constant 5.000000e-01 : f32
    %4 = vector.broadcast %cst_1 : f32 to vector<8x256xf32>
    %5 = arith.mulf %4, %3 : vector<8x256xf32>
    %cst_2 = arith.constant 5.000000e-01 : f32
    %6 = vector.broadcast %cst_2 : f32 to vector<8x256xf32>
    %7 = arith.addf %5, %6 : vector<8x256xf32>
    %8 = arith.mulf %0, %7 : vector<8x256xf32>
    %c0_3 = arith.constant 0 : index
    %c0_4 = arith.constant 0 : index
    %9 = vector.load %arg2[%c0_3, %c0_4] : memref<8x256xf32, #tpu.memory_space<vmem>>, vector<8x256xf32>
    tpu.vector_store %arg2[%c0_3, %c0_4], %8 {strides = array<i32>} : memref<8x256xf32, #tpu.memory_space<vmem>>, vector<8x256xf32>,
    return
  }
  func.func @transform_0(%arg0: i32) -> (i32, i32) {
    %c0_i32 = arith.constant 0 : i32
    %c0_i32_0 = arith.constant 0 : i32
    return %arg0, %c0_i32 : i32, i32
  }
  func.func @transform_1(%arg0: i32) -> (i32, i32) {
    %c0_i32 = arith.constant 0 : i32
    %c0_i32_0 = arith.constant 0 : i32
    return %arg0, %c0_i32 : i32, i32
  }
}

</mosaic_0001>

<bundles_post_ra>
// kernel: tpu_custom_call.1
= control target key start
LH: loop header
LB: loop body
LE: loop exit
PB: predicated region body
PF: predicated region fallthrough
CT: control target
= control target key end

     0   :  { %6 = vsyncpa [#allocation3], 0  ;;  %s118_s0 = inlined_call_operand.hbm [shape: f32[8,256], index: 0, kind: input, shape index: {}]   ;;  %s119_s1 = inlined_call_operand.hbm [shape: f32[8,256], index: 1, kind: output, shape index: {}]  }
   0x1   :  { %7 = vsyncpa [#allocation4], 0  ;;  %s100_s6 = smov [#allocation2]  }
   0x2   :  { %s14_s7 = sshll.u32 %s100_s6, 4  ;;  %s15_s7 = int_to_ptr.vmem [resolvable:$true] %s14_s7 }
   0x3   :  { %s64_s8 = scalar_lea.vmem %s15_s7, 256  ;;  %p69_p1 = scmp.lt.s32.totalorder %s15_s7, %s15_s7 }
   0x4   :  { %p65_p0 = scmp.ne.s32.totalorder %s15_s7, %s64_s8  ;;  %p70_p2 = scmp.lt.s32.totalorder %s64_s8, %s64_s8 }
   0x6   :  { %p71_p3 = por %p70_p2, %p69_p1 }
   0x8   :  { %p72_p4 = pnand %p71_p3, %p65_p0 }
   0xa   :  { %75 = shalt.err (!%p72_p4)
}
   0xb   :  { %17 = dma.hbm_to_vmem [thread:$0]  %s118_s0, 256, %s15_s7, [#allocation3]  }
   0xc   :  { %96 = dma.done.wait [#allocation3], 256  }
   0xd   :  { %97 = vsyncadd [#allocation3], 4294967040  ;;  %v21_v0 = vld [vmem:[#allocation2] sm:$0xff]  ;;  %v22_v1 = vld [vmem:[#allocation2 + $0x8] sm:$0xff]  ;;  %s101_s11 = smov [#allocation5]  }
   0xe   :  { %v23_v2 = vmul.f32 0.5, %v21_v0  ;;  %v24_v3 = vmul.f32 0.5, %v22_v1  ;;  %s41_s12 = sshll.u32 %s101_s11, 4  ;;  %s42_s12 = int_to_ptr.vmem [resolvable:$true] %s41_s12 }
   0xf   :  { %s76_s0 = scalar_lea.vmem %s42_s12, 256  ;;  %p81_p6 = scmp.lt.s32.totalorder %s42_s12, %s42_s12 }
  0x10   :  { %52 = vtanh.f32 %v23_v2  ;;  %p77_p5 = scmp.ne.s32.totalorder %s42_s12, %s76_s0  ;;  %p82_p7 = scmp.lt.s32.totalorder %s76_s0, %s76_s0 }
  0x11   :  { %54 = vtanh.f32 %v24_v3 }
  0x12   :  { %p83_p8 = por %p82_p7, %p81_p6 }
  0x14   :  { %p84_p9 = pnand %p83_p8, %p77_p5 }
  0x1d   :  { %v53_v4 = vpop.eup %52 }
  0x1e   :  { %v55_v5 = vpop.eup %54  ;;  %v27_v6 = vmul.f32 0.5, %v53_v4 }
  0x1f   :  { %v28_v7 = vmul.f32 0.5, %v55_v5 }
  0x20   :  { %v29_v8 = vadd.f32 0.5, %v27_v6 }
  0x21   :  { %v30_v9 = vadd.f32 0.5, %v28_v7 }
  0x22   :  { %v31_v10 = vmul.f32 %v29_v8, %v21_v0 }
  0x23   :  { %v32_v11 = vmul.f32 %v30_v9, %v22_v1 }
  0x24   :  { %33 = vst [vmem:[#allocation5] sm:$0xff] %v31_v10 }
  0x25   :  { %34 = vst [vmem:[#allocation5 + $0x8] sm:$0xff] %v32_v11 }
  0x26   :  { %87 = shalt.err (!%p84_p9)
}
  0x27   :  { %44 = dma.vmem_to_hbm [thread:$0]  %s42_s12, 256, %s119_s1, [#allocation4]  }
  0x28   :  { %98 = dma.done.wait [#allocation4], 256  }
  0x29   :  { %99 = vsyncadd [#allocation4], 4294967040 }
  0x2a   :  { %48 = vsyncpa [#allocation3], 1 }
  0x2b   :  { %49 = vsyncpa [#allocation4], 1 }

</bundles_post_ra>
